<compile_context>
chip_gen: v5e
topology: v5e:2x2
jax: 0.10.0
libtpu: 0.0.40
codegen_flags: <defaults>
</compile_context>

<pallas_src>
import jax
import jax.numpy as jnp
from jax.experimental import pallas as pl
from jax.experimental.pallas import tpu as pltpu


def _round_up(n, m):
    return (n + m - 1) // m * m


def _device_kind():
    try:
        return jax.devices()[0].device_kind.lower()
    except Exception:
        return ""


def _pick_batch_tile(batch):
    # v6e/v7x MXUs are 2x256^2 -> 256-row LHS tiles feed them best; v5e's
    # 4x128^2 is matched by 128. Round to 16 (bf16 packs 16 sublane rows) and
    # aim for >=2 batch tiles so v7x megacore has work for both TCs.
    tb_max = 128 if "v5" in _device_kind() else 256
    tb = _round_up(max(1, pl.cdiv(batch, 2)), 16)
    return max(16, min(tb_max, tb))


def _vmem_limit_bytes(vmem_needed):
    try:
        cap = int(pltpu.get_tpu_info().vmem_capacity_bytes)
    except Exception:
        cap = 64 << 20  # conservative: assume v7x-sized physical VMEM
    # Leave ~45% headroom for compiler scratch / internal padding.
    return int(min(max(vmem_needed, 16 << 20), (cap * 11) // 20))


def _head_kernel(x_ref, w_ref, b_ref, w2_ref, b2_ref, o_ref):
    """Fused (backbone-Linear . fc1) -> ReLU -> fc2 (final ReLU intentionally absent)."""
    # Cast activations to bf16 on the VPU (hidden under the input DMA) so the
    # MXU runs its native bf16 path with f32 accumulation.
    x = x_ref[...].astype(jnp.bfloat16)                               # (tb, din)

    # Fused backbone+fc1 Linear, then ReLU. Padded hidden columns of W/b are
    # exact zeros, so they stay zero through ReLU and contribute nothing to fc2.
    h = jnp.dot(x, w_ref[...], preferred_element_type=jnp.float32) + b_ref[...]
    h = jnp.maximum(h, 0.0)                                           # (tb, hid_p) f32

    # fc2: contract hidden against the w2 row with a trans-B matmul so the
    # result is already a lane-dense (8, tb) slab (row 0 is the real output;
    # rows 1..7 of w2 are zero padding for sublane alignment).
    out8 = jax.lax.dot_general(
        w2_ref[...], h, (((1,), (1,)), ((), ())),
        preferred_element_type=jnp.float32)                           # (8, tb)
    o_ref[...] = (out8[0:1, :] + b2_ref[0, 0]).astype(o_ref.dtype)    # (1, tb)


def prepare_params(params):
    """Fold backbone Linear + fc1 (no nonlinearity in between), pad hidden to a
    lane-dense multiple of 128, and cast the big fused weight to bf16.

    Padding is with zeros, so the math matches the unpadded model up to the
    bf16 rounding of the fused weight / activations."""
    wb, bb, w1, b1, w2, b2 = params
    din, feat = wb.shape
    hidden = w1.shape[1]
    hid_p = _round_up(hidden, 128)

    # Fold: relu((x@wb + bb)@w1 + b1) == relu(x@(wb@w1) + (bb@w1 + b1)).
    w_fused = wb @ w1                                        # (din, hidden) f32
    b_fused = bb @ w1 + b1                                   # (1, hidden)  f32

    w_p = jnp.zeros((din, hid_p), jnp.bfloat16)
    w_p = w_p.at[:, :hidden].set(w_fused.astype(jnp.bfloat16))
    b_p = jnp.zeros((1, hid_p), jnp.float32).at[:, :hidden].set(b_fused)

    # fc2 weight as an (8, hid_p) slab (row 0 real, rest zero) so the fc2 dot
    # has an aligned sublane count; padded hidden columns are zero.
    w2_p = jnp.zeros((8, hid_p), jnp.float32).at[0, :hidden].set(
        w2.reshape(-1).astype(jnp.float32))
    b2_p = b2.reshape(1, 1).astype(jnp.float32)              # SMEM scalar
    return (w_p, b_p, w2_p, b2_p), din


def nn_regression_forward(x, prepared_params, din):
    """x: (B, C, H, W) float32 NCHW. Returns (B, 1) float32."""
    w_p, b_p, w2_p, b2_p = prepared_params
    hid_p = w_p.shape[1]

    B = x.shape[0]
    x_flat = x.reshape(B, -1)                                # free metadata reshape
    assert x_flat.shape[1] == din
    # NOTE: if din is not a multiple of 128 the block simply spans the full
    # (unpadded) din; Mosaic masks the ragged K tail internally.

    tb = _pick_batch_tile(B)
    if B < tb:
        # Tiny batches: pad rows up to one full tile (a few KiB). Larger
        # batches rely on Pallas partial final blocks and skip the copy.
        x_flat = jnp.pad(x_flat, ((0, tb - B), (0, 0)))
    grid_b = pl.cdiv(x_flat.shape[0], tb)
    b_eff = grid_b * tb

    def resident(shape):
        # Same block every grid step -> stays VMEM-resident across the grid.
        return pl.BlockSpec(shape, lambda *_i, _n=len(shape): (0,) * _n)

    flops = 2 * b_eff * din * hid_p + 2 * b_eff * 8 * hid_p
    bytes_accessed = (b_eff * din * 4                         # x (f32) read
                      + w_p.size * 2 + b_p.size * 4 + w2_p.size * 4 + 4
                      + b_eff * 4)                            # lane-dense output

    # Count actual buffer counts: inputs/outputs are double-buffered by default.
    vmem_needed = (2 * (w_p.size * 2 + b_p.size * 4 + w2_p.size * 4)  # resident weights
                   + 2 * (tb * din * 4)                               # x tile (f32)
                   + 2 * (tb * 4)                                     # output row
                   + (2 << 20))                                       # headroom

    out3d = pl.pallas_call(
        _head_kernel,
        out_shape=jax.ShapeDtypeStruct((grid_b, 1, tb), jnp.float32),
        grid=(grid_b,),
        in_specs=[
            pl.BlockSpec((tb, din), lambda i: (i, 0)),        # x batch tile (f32)
            resident((din, hid_p)),                           # fused W (bf16)
            resident((1, hid_p)),                             # fused bias (f32)
            resident((8, hid_p)),                             # fc2 weight slab
            pl.BlockSpec(memory_space=pltpu.MemorySpace.SMEM),  # fc2 bias scalar
        ],
        # Lane-dense output row per grid step; squeezed leading grid dim.
        out_specs=pl.BlockSpec((None, 1, tb), lambda i: (i, 0, 0)),
        compiler_params=pltpu.CompilerParams(
            dimension_semantics=("parallel",),                # megacore on v7x
            vmem_limit_bytes=_vmem_limit_bytes(vmem_needed)),
        cost_estimate=pl.CostEstimate(
            flops=flops, transcendentals=0, bytes_accessed=bytes_accessed),
    )(x_flat, w_p, b_p, w2_p, b2_p)

    return out3d.reshape(b_eff)[:B].reshape(B, 1)


def init_params(key, din, feat_dim, hidden):
    """Deterministic PyTorch-style Linear init (uniform +-1/sqrt(fan_in)).
    Weights stored transposed (in, out) for the kernel."""
    ks = jax.random.split(key, 6)

    def linear(kw, kb, fan_in, fan_out):
        bound = 1.0 / jnp.sqrt(jnp.asarray(fan_in, jnp.float32))
        w = jax.random.uniform(kw, (fan_in, fan_out), jnp.float32, -bound, bound)
        b = jax.random.uniform(kb, (1, fan_out), jnp.float32, -bound, bound)
        return w, b

    wb, bb = linear(ks[0], ks[1], din, feat_dim)     # synthetic backbone proj
    w1, b1 = linear(ks[2], ks[3], feat_dim, hidden)  # fc1
    w2, b2 = linear(ks[4], ks[5], hidden, 1)         # fc2
    return (wb, bb, w1, b1, w2, b2)


if __name__ == "__main__":
    key = jax.random.PRNGKey(0)
    k_x, k_p = jax.random.split(key)

    B, C, H, W = 2, 4, 16, 16        # small NCHW input
    FEAT = 1000                      # backbone output features (fc1 fan-in)
    HIDDEN = 32                      # hidden_size

    x = jax.random.normal(k_x, (B, C, H, W), jnp.float32)
    params = init_params(k_p, C * H * W, FEAT, HIDDEN)
    prepared, din = prepare_params(params)

    out = nn_regression_forward(x, prepared, din)
    out = jax.block_until_ready(out)

    # Pure-JAX reference replicating the kernel's fused-weight bf16 rounding.
    wb, bb, w1, b1, w2, b2 = params
    w_fused = wb @ w1
    b_fused = bb @ w1 + b1
    x_flat = x.reshape(B, -1)
    xb = x_flat.astype(jnp.bfloat16).astype(jnp.float32)
    wf = w_fused.astype(jnp.bfloat16).astype(jnp.float32)
    h = jnp.maximum(xb @ wf + b_fused, 0.0)
    ref = h @ w2 + b2.reshape(1, 1)

    assert out.shape == (B, 1)
    assert jnp.allclose(out, ref, atol=5e-3, rtol=5e-3), (out, ref)

    print("KERNEL_OK")
</pallas_src>

<mosaic_0001>
module attributes {stable_mosaic.version = 11 : i64} {
  func.func @_head_kernel(%arg0: i32, %arg1: memref<16x1024xf32, #tpu.memory_space<vmem>>, %arg2: memref<1024x128xbf16, #tpu.memory_space<vmem>>, %arg3: memref<1x128xf32, #tpu.memory_space<vmem>>, %arg4: memref<8x128xf32, #tpu.memory_space<vmem>>, %arg5: memref<1x1xf32, #tpu.memory_space<smem>>, %arg6: memref<1x1x16xf32, #tpu.memory_space<vmem>>) attributes {dimension_semantics = [#tpu.dimension_semantics<parallel>], iteration_bounds = array<i64: 1>, scalar_prefetch = 0 : i64, scratch_operands = 0 : i64, tpu.core_type = #tpu.core_type<tc>, window_params = [{transform_indices = @transform_0, window_bounds = array<i64: 16, 1024>}, {pipeline_mode = #tpu.pipeline_mode<synchronous>, transform_indices = @transform_1, window_bounds = array<i64: 1024, 128>}, {pipeline_mode = #tpu.pipeline_mode<synchronous>, transform_indices = @transform_2, window_bounds = array<i64: 1, 128>}, {pipeline_mode = #tpu.pipeline_mode<synchronous>, transform_indices = @transform_3, window_bounds = array<i64: 8, 128>}, {transform_indices = @transform_4, window_bounds = array<i64: 1, 1>}, {transform_indices = @transform_5, window_bounds = array<i64: 1, 1, 16>}]} {
    %c0 = arith.constant 0 : index
    %c0_0 = arith.constant 0 : index
    %0 = vector.load %arg1[%c0, %c0_0] : memref<16x1024xf32, #tpu.memory_space<vmem>>, vector<16x1024xf32>
    %1 = arith.truncf %0 : vector<16x1024xf32> to vector<16x1024xbf16>
    %c0_1 = arith.constant 0 : index
    %c0_2 = arith.constant 0 : index
    %2 = vector.load %arg2[%c0_1, %c0_2] : memref<1024x128xbf16, #tpu.memory_space<vmem>>, vector<1024x128xbf16>
    %cst = arith.constant dense<0.000000e+00> : vector<16x128xf32>
    %3 = tpu.matmul %1, %2, %cst {dimension_numbers = #tpu.dot_dimension_numbers<[1], [0], [0], [1], [0, 0, 1, 1], [], []>} : vector<16x1024xbf16>, vector<1024x128xbf16>, vector<16x128xf32> -> vector<16x128xf32>
    %c0_3 = arith.constant 0 : index
    %c0_4 = arith.constant 0 : index
    %4 = vector.load %arg3[%c0_3, %c0_4] : memref<1x128xf32, #tpu.memory_space<vmem>>, vector<1x128xf32>
    %5 = vector.broadcast %4 : vector<1x128xf32> to vector<16x128xf32>
    %6 = arith.addf %3, %5 : vector<16x128xf32>
    %cst_5 = arith.constant 0.000000e+00 : f32
    %7 = vector.broadcast %cst_5 : f32 to vector<16x128xf32>
    %8 = arith.maximumf %6, %7 : vector<16x128xf32>
    %c0_6 = arith.constant 0 : index
    %c0_7 = arith.constant 0 : index
    %9 = vector.load %arg4[%c0_6, %c0_7] : memref<8x128xf32, #tpu.memory_space<vmem>>, vector<8x128xf32>
    %cst_8 = arith.constant dense<0.000000e+00> : vector<8x16xf32>
    %10 = tpu.matmul %9, %8, %cst_8 {dimension_numbers = #tpu.dot_dimension_numbers<[1], [1], [0], [0], [0, 0, 1, 0], [], []>} : vector<8x128xf32>, vector<16x128xf32>, vector<8x16xf32> -> vector<8x16xf32>
    %11 = vector.extract_strided_slice %10 {offsets = [0, 0], sizes = [1, 16], strides = [1, 1]} : vector<8x16xf32> to vector<1x16xf32>
    %c0_9 = arith.constant 0 : index
    %c0_10 = arith.constant 0 : index
    %12 = memref.load %arg5[%c0_9, %c0_10] : memref<1x1xf32, #tpu.memory_space<smem>>
    %13 = vector.broadcast %12 : f32 to vector<1x16xf32>
    %14 = arith.addf %11, %13 : vector<1x16xf32>
    %c0_11 = arith.constant 0 : index
    %c0_12 = arith.constant 0 : index
    %c0_13 = arith.constant 0 : index
    %15 = vector.load %arg6[%c0_11, %c0_12, %c0_13] : memref<1x1x16xf32, #tpu.memory_space<vmem>>, vector<1x1x16xf32>
    %16 = vector.shape_cast %15 : vector<1x1x16xf32> to vector<1x16xf32>
    %17 = vector.shape_cast %14 : vector<1x16xf32> to vector<1x1x16xf32>
    tpu.vector_store %arg6[%c0_11, %c0_12, %c0_13], %17 {strides = array<i32>} : memref<1x1x16xf32, #tpu.memory_space<vmem>>, vector<1x1x16xf32>,
    return
  }
  func.func @transform_0(%arg0: i32) -> (i32, i32) {
    %c0_i32 = arith.constant 0 : i32
    %c0_i32_0 = arith.constant 0 : i32
    return %arg0, %c0_i32 : i32, i32
  }
  func.func @transform_1(%arg0: i32) -> (i32, i32) {
    %c0_i32 = arith.constant 0 : i32
    %c0_i32_0 = arith.constant 0 : i32
    %c0_i32_1 = arith.constant 0 : i32
    return %c0_i32, %c0_i32_0 : i32, i32
  }
  func.func @transform_2(%arg0: i32) -> (i32, i32) {
    %c0_i32 = arith.constant 0 : i32
    %c0_i32_0 = arith.constant 0 : i32
    %c0_i32_1 = arith.constant 0 : i32
    return %c0_i32, %c0_i32_0 : i32, i32
  }
  func.func @transform_3(%arg0: i32) -> (i32, i32) {
    %c0_i32 = arith.constant 0 : i32
    %c0_i32_0 = arith.constant 0 : i32
    %c0_i32_1 = arith.constant 0 : i32
    return %c0_i32, %c0_i32_0 : i32, i32
  }
  func.func @transform_4(%arg0: i32) -> (i32, i32) {
    %c0_i32 = arith.constant 0 : i32
    %c0_i32_0 = arith.constant 0 : i32
    %c0_i32_1 = arith.constant 0 : i32
    return %c0_i32, %c0_i32_0 : i32, i32
  }
  func.func @transform_5(%arg0: i32) -> (i32, i32, i32) {
    %c0_i32 = arith.constant 0 : i32
    %c0_i32_0 = arith.constant 0 : i32
    %c0_i32_1 = arith.constant 0 : i32
    return %arg0, %c0_i32, %c0_i32_0 : i32, i32, i32
  }
}

</mosaic_0001>

<bundles_post_ra>
// kernel: tpu_custom_call.1
= control target key start
LH: loop header
LB: loop body
LE: loop exit
PB: predicated region body
PF: predicated region fallthrough
CT: control target
= control target key end

     0   :  { %11 = vsyncpa [#allocation4], 0  ;;  %s1250_s0 = inlined_call_operand.hbm [shape: f32[16,1024], index: 0, kind: input, shape index: {}]   ;;  %s1251_s1 = inlined_call_operand.hbm [shape: bf16[1024,128], index: 1, kind: input, shape index: {}]   ;;  %s1252_s2 = inlined_call_operand.vmem [shape: f32[1,128], index: 2, kind: input, shape index: {}]   ;;  %s1253_s3 = inlined_call_operand.hbm [shape: f32[8,128], index: 3, kind: input, shape index: {}]   ;;  %s1254_s4 = inlined_call_operand.<no memory space> [shape: f32[1,1], index: 4, kind: input, shape index: {}]   ;;  %s1255_s5 = inlined_call_operand.hbm [shape: f32[1,1,16], index: 5, kind: output, shape index: {}]  }
   0x1   :  { %12 = vsyncpa [#allocation7], 0  ;;  %s31_s20 = sshll.u32 %s1251_s1, 4  ;;  %s32_s20 = int_to_ptr.hbm [resolvable:$true] %s31_s20 }
   0x2   :  { %13 = vsyncpa [#allocation5], 0  ;;  %s1195_s21 = smov [#allocation6]   ;;  %s18_s25 = sshll.u32 %s1250_s0, 4  ;;  %s19_s25 = int_to_ptr.hbm [resolvable:$true] %s18_s25 }
   0x3   :  { %s33_s22 = sshll.u32 %s1195_s21, 4  ;;  %s1196_s26 = smov 64   ;;  %s34_s22 = int_to_ptr.vmem [resolvable:$true] %s33_s22 }
   0x4   :  { %s1197_s27 = smov 4   ;;  %s1198_s28 = smov [#allocation3]  }
   0x5   :  { %39 = dma.hbm_to_vmem [thread:$0]  %s32_s20, 8192, %s34_s22, [#allocation7], %s1196_s26, %s1196_s26, %s1197_s27  }
   0x6   :  { %s20_s29 = sshll.u32 %s1198_s28, 4  ;;  %s47_s1 = sshll.u32 %s1253_s3, 4  ;;  %s21_s29 = int_to_ptr.vmem [resolvable:$true] %s20_s29  ;;  %s48_s1 = int_to_ptr.hbm [resolvable:$true] %s47_s1 }
   0x7   :  { %s1199_s7 = smov 1024   ;;  %s1200_s8 = smov [#allocation8]  }
   0x8   :  { %26 = dma.hbm_to_vmem [thread:$0]  %s19_s25, 2048, %s21_s29, [#allocation4], %s1199_s7, %s1199_s7, %s1196_s26  }
   0x9   :  { %s49_s9 = sshll.u32 %s1200_s8, 4  ;;  %s50_s9 = int_to_ptr.vmem [resolvable:$true] %s49_s9 }
   0xa   :  { %52 = dma.hbm_to_vmem [thread:$0]  %s48_s1, 128, %s50_s9, [#allocation7]  }
   0xb   :  { %1189 = dma.done.wait [#allocation4], 2048  }
   0xc   :  { %1190 = vsyncadd [#allocation4], 4294965248 }
   0xd   :  { %1191 = dma.done.wait [#allocation7], 8320  }
   0xe   :  { %1192 = vsyncadd [#allocation7], 4294958976  ;;  %v1028_v0 = vld [vmem:[#allocation6 + $0x38] sm:$0xff]  ;;  %v1027_v4 = vld [vmem:[#allocation6 + $0x30] sm:$0xff]  ;;  %s1201_s11 = smov [#allocation9]   ;;  %s754_s15 = sshll.u32 %s1255_s5, 4  ;;  %s755_s15 = int_to_ptr.hbm [resolvable:$true] %s754_s15 }
   0xf   :  { %v1036_v1 = vld [vmem:[#allocation6 + $0x78] sm:$0xff]  ;;  %607 = vmatpush.bf16.msra.mxu0 %v1028_v0  ;;  %v1035_v5 = vld [vmem:[#allocation6 + $0x70] sm:$0xff]  ;;  %v1026_v8 = vld [vmem:[#allocation6 + $0x28] sm:$0xff]  ;;  %s752_s12 = sshll.u32 %s1201_s11, 4  ;;  %vm745_vm0 = vcmask 122880   ;;  %s753_s12 = int_to_ptr.vmem [resolvable:$true] %s752_s12 }
  0x10   :  { %v1044_v2 = vld [vmem:[#allocation6 + $0xb8] sm:$0xff]  ;;  %621 = vmatpush.bf16.msra.mxu1 %v1036_v1  ;;  %v1043_v6 = vld [vmem:[#allocation6 + $0xb0] sm:$0xff]  ;;  %v1034_v9 = vld [vmem:[#allocation6 + $0x68] sm:$0xff] }
  0x11   :  { %v1052_v3 = vld [vmem:[#allocation6 + $0xf8] sm:$0xff]  ;;  %635 = vmatpush.bf16.msra.mxu2 %v1044_v2  ;;  %v1051_v7 = vld [vmem:[#allocation6 + $0xf0] sm:$0xff]  ;;  %v1042_v10 = vld [vmem:[#allocation6 + $0xa8] sm:$0xff] }
  0x12   :  { %649 = vmatpush.bf16.msra.mxu3 %v1052_v3  ;;  %v1050_v11 = vld [vmem:[#allocation6 + $0xe8] sm:$0xff]  ;;  %v1025_v12 = vld [vmem:[#allocation6 + $0x20] sm:$0xff]  ;;  %v1024_v16 = vld [vmem:[#allocation6 + $0x18] sm:$0xff] }
  0x13   :  { %608 = vmatpush.bf16.msra.mxu0 %v1027_v4  ;;  %v1033_v13 = vld [vmem:[#allocation6 + $0x60] sm:$0xff]  ;;  %v1032_v17 = vld [vmem:[#allocation6 + $0x58] sm:$0xff]  ;;  %v1023_v20 = vld [vmem:[#allocation6 + $0x10] sm:$0xff] }
  0x14   :  { %622 = vmatpush.bf16.msra.mxu1 %v1035_v5  ;;  %v1041_v14 = vld [vmem:[#allocation6 + $0xa0] sm:$0xff]  ;;  %v1040_v18 = vld [vmem:[#allocation6 + $0x98] sm:$0xff]  ;;  %v1031_v21 = vld [vmem:[#allocation6 + $0x50] sm:$0xff] }
  0x15   :  { %636 = vmatpush.bf16.msra.mxu2 %v1043_v6  ;;  %v1049_v15 = vld [vmem:[#allocation6 + $0xe0] sm:$0xff]  ;;  %v1048_v19 = vld [vmem:[#allocation6 + $0xd8] sm:$0xff]  ;;  %v1039_v22 = vld [vmem:[#allocation6 + $0x90] sm:$0xff] }
  0x16   :  { %650 = vmatpush.bf16.msra.mxu3 %v1051_v7  ;;  %v1047_v23 = vld [vmem:[#allocation6 + $0xd0] sm:$0xff]  ;;  %v1022_v24 = vld [vmem:[#allocation6 + $0x8] sm:$0xff]  ;;  %v1021_v28 = vld [vmem:[#allocation6] sm:$0xff] }
  0x17   :  { %609 = vmatpush.bf16.msra.mxu0 %v1026_v8  ;;  %v1030_v25 = vld [vmem:[#allocation6 + $0x48] sm:$0xff]  ;;  %v1029_v29 = vld [vmem:[#allocation6 + $0x40] sm:$0xff]  ;;  %v1060_v32 = vld [vmem:[#allocation6 + $0x138] sm:$0xff] }
  0x18   :  { %623 = vmatpush.bf16.msra.mxu1 %v1034_v9  ;;  %v1038_v26 = vld [vmem:[#allocation6 + $0x88] sm:$0xff]  ;;  %v1037_v30 = vld [vmem:[#allocation6 + $0x80] sm:$0xff]  ;;  %v1068_v33 = vld [vmem:[#allocation6 + $0x178] sm:$0xff] }
  0x19   :  { %637 = vmatpush.bf16.msra.mxu2 %v1042_v10  ;;  %v1046_v27 = vld [vmem:[#allocation6 + $0xc8] sm:$0xff]  ;;  %v1045_v31 = vld [vmem:[#allocation6 + $0xc0] sm:$0xff]  ;;  %v69_v34 = vld [vmem:[#allocation3 + $0x10] sm:$0xff] }
  0x1a   :  { %651 = vmatpush.bf16.msra.mxu3 %v1050_v11  ;;  %v77_v35 = vld [vmem:[#allocation3 + $0x50] sm:$0xff]  ;;  %v67_v36 = vld [vmem:[#allocation3] sm:$0xff]  ;;  %v70_v38 = vld [vmem:[#allocation3 + $0x18] sm:$0xff] }
  0x1b   :  { %610 = vmatpush.bf16.msra.mxu0 %v1025_v12  ;;  %v75_v37 = vld [vmem:[#allocation3 + $0x40] sm:$0xff]  ;;  %v78_v39 = vld [vmem:[#allocation3 + $0x58] sm:$0xff]  ;;  %v68_v40 = vld [vmem:[#allocation3 + $0x8] sm:$0xff]  ;;  %v85_v44 = vpack.c.bf16 %v77_v35, %v69_v34 }
  0x1c   :  { %624 = vmatpush.bf16.msra.mxu1 %v1033_v13  ;;  %v76_v41 = vld [vmem:[#allocation3 + $0x48] sm:$0xff]  ;;  %v1076_v42 = vld [vmem:[#allocation6 + $0x1b8] sm:$0xff]  ;;  %v83_v45 = vpack.c.bf16 %v75_v37, %v67_v36  ;;  %v86_v46 = vpack.c.bf16 %v78_v39, %v70_v38  ;;  %v1059_v48 = vld [vmem:[#allocation6 + $0x130] sm:$0xff] }
  0x1d   :  { %638 = vmatpush.bf16.msra.mxu2 %v1041_v14  ;;  %v1084_v43 = vld [vmem:[#allocation6 + $0x1f8] sm:$0xff]  ;;  %v84_v47 = vpack.c.bf16 %v76_v41, %v68_v40  ;;  %v1067_v49 = vld [vmem:[#allocation6 + $0x170] sm:$0xff]  ;;  %v1058_v52 = vld [vmem:[#allocation6 + $0x128] sm:$0xff] }
  0x1e   :  { %652 = vmatpush.bf16.msra.mxu3 %v1049_v15  ;;  %v1075_v50 = vld [vmem:[#allocation6 + $0x1b0] sm:$0xff]  ;;  %v1066_v53 = vld [vmem:[#allocation6 + $0x168] sm:$0xff]  ;;  %v1057_v56 = vld [vmem:[#allocation6 + $0x120] sm:$0xff] }
  0x1f   :  { %611 = vmatpush.bf16.msra.mxu0 %v1024_v16  ;;  %v1083_v51 = vld [vmem:[#allocation6 + $0x1f0] sm:$0xff]  ;;  %v1074_v54 = vld [vmem:[#allocation6 + $0x1a8] sm:$0xff]  ;;  %v1065_v57 = vld [vmem:[#allocation6 + $0x160] sm:$0xff] }
  0x20   :  { %625 = vmatpush.bf16.msra.mxu1 %v1032_v17  ;;  %v1082_v55 = vld [vmem:[#allocation6 + $0x1e8] sm:$0xff]  ;;  %v1073_v58 = vld [vmem:[#allocation6 + $0x1a0] sm:$0xff]  ;;  %v1056_v60 = vld [vmem:[#allocation6 + $0x118] sm:$0xff] }
  0x21   :  { %639 = vmatpush.bf16.msra.mxu2 %v1040_v18  ;;  %v1081_v59 = vld [vmem:[#allocation6 + $0x1e0] sm:$0xff]  ;;  %v1064_v61 = vld [vmem:[#allocation6 + $0x158] sm:$0xff]  ;;  %v1055_v0 = vld [vmem:[#allocation6 + $0x110] sm:$0xff] }
  0x22   :  { %653 = vmatpush.bf16.msra.mxu3 %v1048_v19  ;;  %v1072_v62 = vld [vmem:[#allocation6 + $0x198] sm:$0xff]  ;;  %v1063_v1 = vld [vmem:[#allocation6 + $0x150] sm:$0xff]  ;;  %v1054_v4 = vld [vmem:[#allocation6 + $0x108] sm:$0xff] }
  0x23   :  { %612 = vmatpush.bf16.msra.mxu0 %v1023_v20  ;;  %v1080_v63 = vld [vmem:[#allocation6 + $0x1d8] sm:$0xff]  ;;  %v1071_v2 = vld [vmem:[#allocation6 + $0x190] sm:$0xff]  ;;  %v1062_v5 = vld [vmem:[#allocation6 + $0x148] sm:$0xff] }
  0x24   :  { %626 = vmatpush.bf16.msra.mxu1 %v1031_v21  ;;  %v1079_v3 = vld [vmem:[#allocation6 + $0x1d0] sm:$0xff]  ;;  %v1070_v6 = vld [vmem:[#allocation6 + $0x188] sm:$0xff]  ;;  %v1053_v8 = vld [vmem:[#allocation6 + $0x100] sm:$0xff] }
  0x25   :  { %640 = vmatpush.bf16.msra.mxu2 %v1039_v22  ;;  %v1078_v7 = vld [vmem:[#allocation6 + $0x1c8] sm:$0xff]  ;;  %v1061_v9 = vld [vmem:[#allocation6 + $0x140] sm:$0xff]  ;;  %v73_v16 = vld [vmem:[#allocation3 + $0x30] sm:$0xff] }
  0x26   :  { %654 = vmatpush.bf16.msra.mxu3 %v1047_v23  ;;  %v1069_v10 = vld [vmem:[#allocation6 + $0x180] sm:$0xff]  ;;  %v72_v14 = vld [vmem:[#allocation3 + $0x28] sm:$0xff]  ;;  %v81_v17 = vld [vmem:[#allocation3 + $0x70] sm:$0xff] }
  0x27   :  { %613 = vmatpush.bf16.msra.mxu0 %v1022_v24  ;;  %v1077_v11 = vld [vmem:[#allocation6 + $0x1c0] sm:$0xff]  ;;  %v80_v15 = vld [vmem:[#allocation3 + $0x68] sm:$0xff]  ;;  %v74_v18 = vld [vmem:[#allocation3 + $0x38] sm:$0xff]  ;;  %v89_v22 = vpack.c.bf16 %v81_v17, %v73_v16 }
  0x28   :  { %627 = vmatpush.bf16.msra.mxu1 %v1030_v25  ;;  %v71_v12 = vld [vmem:[#allocation3 + $0x20] sm:$0xff]  ;;  %v82_v19 = vld [vmem:[#allocation3 + $0x78] sm:$0xff]  ;;  %v88_v21 = vpack.c.bf16 %v80_v15, %v72_v14 }
  0x29   :  { %641 = vmatpush.bf16.msra.mxu2 %v1038_v26  ;;  %v79_v13 = vld [vmem:[#allocation3 + $0x60] sm:$0xff]  ;;  %v90_v23 = vpack.c.bf16 %v82_v19, %v74_v18 }
  0x2a   :  { %655 = vmatpush.bf16.msra.mxu3 %v1046_v27  ;;  %v87_v20 = vpack.c.bf16 %v79_v13, %v71_v12 }
  0x2b   :  { %614 = vmatpush.bf16.msra.mxu0 %v1021_v28  ;;  %v1092_v28 = vld [vmem:[%s1252_s2] ss:$0 sm:$0xff] }
  0x2c   :  { %628 = vmatpush.bf16.msra.mxu1 %v1029_v29 }
  0x2d   :  { %642 = vmatpush.bf16.msra.mxu2 %v1037_v30 }
  0x2e   :  { %656 = vmatpush.bf16.msra.mxu3 %v1045_v31  ;;  %615 = vmatmul.bf16.vlgmr.msra.gmra.mxu0 %v83_v45 }
  0x2f   :  { %663 = vmatpush.bf16.msrb.mxu0 %v1060_v32  ;;  %629 = vmatmul.bf16.vlgmr.msra.gmra.mxu1 %v84_v47 }
  0x30   :  { %677 = vmatpush.bf16.msrb.mxu1 %v1068_v33  ;;  %643 = vmatmul.bf16.vlgmr.msra.gmra.mxu2 %v85_v44 }
  0x31   :  { %691 = vmatpush.bf16.msrb.mxu2 %v1076_v42  ;;  %657 = vmatmul.bf16.vlgmr.msra.gmra.mxu3 %v86_v46 }
  0x32   :  { %705 = vmatpush.bf16.msrb.mxu3 %v1084_v43 }
  0x33   :  { %664 = vmatpush.bf16.msrb.mxu0 %v1059_v48 }
  0x34   :  { %678 = vmatpush.bf16.msrb.mxu1 %v1067_v49 }
  0x35   :  { %692 = vmatpush.bf16.msrb.mxu2 %v1075_v50 }
  0x36   :  { %706 = vmatpush.bf16.msrb.mxu3 %v1083_v51 }
  0x37   :  { %665 = vmatpush.bf16.msrb.mxu0 %v1058_v52 }
  0x38   :  { %679 = vmatpush.bf16.msrb.mxu1 %v1066_v53 }
  0x39   :  { %693 = vmatpush.bf16.msrb.mxu2 %v1074_v54 }
  0x3a   :  { %707 = vmatpush.bf16.msrb.mxu3 %v1082_v55 }
  0x3b   :  { %666 = vmatpush.bf16.msrb.mxu0 %v1057_v56 }
  0x3c   :  { %680 = vmatpush.bf16.msrb.mxu1 %v1065_v57 }
  0x3d   :  { %694 = vmatpush.bf16.msrb.mxu2 %v1073_v58 }
  0x3e   :  { %708 = vmatpush.bf16.msrb.mxu3 %v1081_v59  ;;  %v721_v59 = vld [vmem:[#allocation8] sm:$0xff] }
  0x3f   :  { %667 = vmatpush.bf16.msrb.mxu0 %v1056_v60  ;;  %v743_v60 = vstv %s1254_s4 }
  0x40   :  { %681 = vmatpush.bf16.msrb.mxu1 %v1064_v61 }
  0x41   :  { %695 = vmatpush.bf16.msrb.mxu2 %v1072_v62 }
  0x42   :  { %709 = vmatpush.bf16.msrb.mxu3 %v1080_v63 }
  0x43   :  { %668 = vmatpush.bf16.msrb.mxu0 %v1055_v0 }
  0x44   :  { %682 = vmatpush.bf16.msrb.mxu1 %v1063_v1 }
  0x45   :  { %696 = vmatpush.bf16.msrb.mxu2 %v1071_v2 }
  0x46   :  { %710 = vmatpush.bf16.msrb.mxu3 %v1079_v3 }
  0x47   :  { %669 = vmatpush.bf16.msrb.mxu0 %v1054_v4 }
  0x48   :  { %683 = vmatpush.bf16.msrb.mxu1 %v1062_v5 }
  0x49   :  { %697 = vmatpush.bf16.msrb.mxu2 %v1070_v6 }
  0x4a   :  { %711 = vmatpush.bf16.msrb.mxu3 %v1078_v7 }
  0x4b   :  { %670 = vmatpush.bf16.msrb.mxu0 %v1053_v8 }
  0x4c   :  { %684 = vmatpush.bf16.msrb.mxu1 %v1061_v9 }
  0x4d   :  { %698 = vmatpush.bf16.msrb.mxu2 %v1069_v10 }
  0x4e   :  { %712 = vmatpush.bf16.msrb.mxu3 %v1077_v11  ;;  %671 = vmatmul.bf16.vlgmr.msrb.gmra.mxu0 %v87_v20 }
  0x4f   :  { %685 = vmatmul.bf16.vlgmr.msrb.gmra.mxu1 %v88_v21 }
  0x50   :  { %699 = vmatmul.bf16.vlgmr.msrb.gmra.mxu2 %v89_v22 }
  0x51   :  { %713 = vmatmul.bf16.vlgmr.msrb.gmra.mxu3 %v90_v23 }
  0xab   :  { %v616_v24 = vpop.f32.mrf.mxu0 }
  0xac   :  { %v630_v25 = vpop.f32.mrf.mxu1  ;;  %v617_v31 = vadd.f32 %v1092_v28, %v616_v24 }
  0xae   :  { %v631_v35 = vadd.f32 %v630_v25, %v617_v31 }
  0xb3   :  { %v644_v26 = vpop.f32.mrf.mxu2  ;;  %v618_v29 = vpop.f32.mrf.mxu0 }
  0xb4   :  { %v658_v27 = vpop.f32.mrf.mxu3  ;;  %v632_v30 = vpop.f32.mrf.mxu1  ;;  %v619_v32 = vadd.f32 %v1092_v28, %v618_v29  ;;  %v645_v39 = vadd.f32 %v644_v26, %v631_v35 }
  0xb6   :  { %v633_v36 = vadd.f32 %v632_v30, %v619_v32  ;;  %v659_v43 = vadd.f32 %v658_v27, %v645_v39 }
  0xbb   :  { %v646_v33 = vpop.f32.mrf.mxu2 }
  0xbc   :  { %v660_v34 = vpop.f32.mrf.mxu3  ;;  %v647_v40 = vadd.f32 %v646_v33, %v633_v36 }
  0xbe   :  { %v661_v44 = vadd.f32 %v660_v34, %v647_v40 }
  0xcb   :  { %v672_v37 = vpop.f32.mrf.mxu0 }
  0xcc   :  { %v686_v38 = vpop.f32.mrf.mxu1  ;;  %v673_v46 = vadd.f32 %v672_v37, %v659_v43 }
  0xce   :  { %v687_v49 = vadd.f32 %v686_v38, %v673_v46 }
  0xd3   :  { %v700_v41 = vpop.f32.mrf.mxu2  ;;  %v674_v45 = vpop.f32.mrf.mxu0 }
  0xd4   :  { %v714_v42 = vpop.f32.mrf.mxu3  ;;  %v675_v47 = vadd.f32 %v674_v45, %v661_v44  ;;  %v688_v48 = vpop.f32.mrf.mxu1  ;;  %v701_v52 = vadd.f32 %v700_v41, %v687_v49 }
  0xd6   :  { %v689_v50 = vadd.f32 %v688_v48, %v675_v47  ;;  %v715_v56 = vadd.f32 %v714_v42, %v701_v52 }
  0xd8   :  { %v719_v58 = vmax.f32 %v715_v56, 0.0 }
  0xdb   :  { %v702_v51 = vpop.f32.mrf.mxu2 }
  0xdc   :  { %v703_v53 = vadd.f32 %v702_v51, %v689_v50  ;;  %v716_v54 = vpop.f32.mrf.mxu3 }
  0xde   :  { %v717_v55 = vadd.f32 %v716_v54, %v703_v53 }
  0xe0   :  { %v720_v57 = vmax.f32 %v717_v55, 0.0 }
  0xe2   :  { %736 = vmatpush.xpose.msra.mxu0 %v720_v57 }
  0xe6   :  { %737 = vmatpush.xpose.msra.mxu0 %v719_v58 }
  0xe9   :  { %738 = vmatmul.f32.vlgmr.msra.gmra.mxu0 %v721_v59 }
 0x166   :  { %v739_v61 = vpop.f32.mrf.mxu0 }
 0x167   :  { %v744_v62 = vadd.f32 %v743_v60, %v739_v61 }
 0x169   :  { %746 = vst.msk [vmem:[#allocation9] sm:$0x1] %vm745_vm0, %v744_v62 }
 0x16a   :  { %757 = dma.vmem_to_hbm [thread:$0]  %s753_s12, 16, %s755_s15, [#allocation5]  }
 0x16b   :  { %1193 = dma.done.wait [#allocation5], 16  }
 0x16c   :  { %1194 = vsyncadd [#allocation5], 4294967280 }
 0x16d   :  { %762 = vsyncpa [#allocation4], 1 }
 0x16e   :  { %763 = vsyncpa [#allocation7], 1 }
 0x16f   :  { %764 = vsyncpa [#allocation5], 1 }

</bundles_post_ra>
